<compile_context>
chip_gen: v7x
topology: tpu7x:2x2x1
jax: 0.10.0
libtpu: 0.0.40
codegen_flags: <defaults>
</compile_context>

<pallas_src>
import jax
import jax.numpy as jnp
from jax.experimental import pallas as pl
from jax.experimental.pallas import tpu as pltpu


def _round_up(x, m):
    return ((x + m - 1) // m) * m


def _head_kernel(x_ref, w_ref, b_ref, o_ref):
    # dropout (eval mode) is identity; dense + out_proj are pre-fused into w/b.
    x = x_ref[...].astype(jnp.bfloat16)                               # in-kernel cast (VPU)
    y = jnp.dot(x, w_ref[...], preferred_element_type=jnp.float32)    # single MXU pass, f32 acc
    o_ref[...] = jax.nn.sigmoid(y + b_ref[...]).astype(o_ref.dtype)   # f32 epilogue (EUP sigmoid)


def _vmem_cap_bytes():
    """Per-generation scoped-VMEM ceiling (85% of physical, conservative fallback)."""
    phys = None
    try:
        info = pltpu.get_tpu_info()
        phys = getattr(info, "vmem_capacity_bytes", None)
    except Exception:
        phys = None
    if not phys:
        phys = 64 << 20  # smallest current generation (v7x per-TC VMEM)
    return int(phys * 0.85)


def _vmem_budget_bytes(tm, HP, LP, x_itemsize, out_itemsize):
    bf16, f32 = 2, 4
    footprint = (
        2 * tm * HP * x_itemsize      # double-buffered input tile
        + 2 * HP * LP * bf16          # fused weight (grid-invariant, 2 bufs)
        + 2 * 8 * LP * f32            # fused bias incl. sublane padding (2 bufs)
        + 2 * tm * LP * out_itemsize  # double-buffered output tile
    )
    budget = max(2 * footprint, 32 << 20)   # 2x headroom for compiler temporaries
    return int(min(budget, _vmem_cap_bytes()))


def classification_head(features, w_dense, b_dense, w_out, b_out, *,
                        tm=512, out_dtype=None):
    """features: (M, H) f32.
       w_dense: (H, H) laid out (in, out); b_dense: (H,)
       w_out:   (H, L) laid out (in, out); b_out:   (L,)"""
    M, H = features.shape
    L = w_out.shape[1]
    out_dtype = jnp.dtype(features.dtype if out_dtype is None else out_dtype)

    # ---- fuse the two Linears (exact in f32: no activation between them) ----
    w_fused = jnp.dot(w_dense.astype(jnp.float32), w_out.astype(jnp.float32))      # (H, L)
    b_fused = (jnp.dot(b_dense.astype(jnp.float32), w_out.astype(jnp.float32))
               + b_out.astype(jnp.float32))                                        # (L,)

    # ---- tiling ----
    LP = _round_up(max(L, 128), 128)              # lane-dense output (unmasked vst)
    HP = H if H % 128 == 0 else _round_up(H, 128)  # lane-dense x loads / full MXU K feed
    # Row tile: multiple of 8, default 512, capped so the grid has >=2 steps
    # (keeps both v7x TensorCores busy under "parallel" semantics).
    tm = max(8, min(tm, _round_up(pl.cdiv(M, 2), 8)))
    grid_m = pl.cdiv(M, tm)

    # ---- operands ----
    if HP != H:
        # Small / ragged H only: one cheap pad+cast pass gives lane-dense tiles.
        x_in = jnp.zeros((M, HP), jnp.bfloat16).at[:, :H].set(
            features.astype(jnp.bfloat16))
    else:
        x_in = features  # stream f32 straight from HBM; cast to bf16 in-kernel

    w = jnp.zeros((HP, LP), jnp.bfloat16).at[:H, :L].set(w_fused.astype(jnp.bfloat16))
    b = jnp.zeros((1, LP), jnp.float32).at[0, :L].set(b_fused)

    out = pl.pallas_call(
        _head_kernel,
        out_shape=jax.ShapeDtypeStruct((M, LP), out_dtype),
        grid_spec=pltpu.PrefetchScalarGridSpec(
            num_scalar_prefetch=0,
            grid=(grid_m,),
            in_specs=[
                pl.BlockSpec((tm, HP), lambda i: (i, 0)),   # features tile (streamed)
                pl.BlockSpec((HP, LP), lambda i: (0, 0)),   # fused weight (resident)
                pl.BlockSpec((1, LP), lambda i: (0, 0)),    # fused bias (resident)
            ],
            out_specs=pl.BlockSpec((tm, LP), lambda i: (i, 0)),
        ),
        compiler_params=pltpu.CompilerParams(
            dimension_semantics=("parallel",),
            vmem_limit_bytes=_vmem_budget_bytes(
                tm, HP, LP, x_in.dtype.itemsize, out_dtype.itemsize)),
    )(x_in, w, b)

    # Slice away the label-lane padding (rows were never padded: cdiv grid).
    return out[:, :L] if LP != L else out


# ------------------------------ references ---------------------------------

def reference_f32(features, w_dense, b_dense, w_out, b_out):
    h = features @ w_dense + b_dense
    y = h @ w_out + b_out
    return jax.nn.sigmoid(y)


def reference_fused_bf16(features, w_dense, b_dense, w_out, b_out):
    # Mirrors the kernel numerics: f32 weight fusion, bf16 MXU, f32 accumulate.
    wf = jnp.dot(w_dense.astype(jnp.float32), w_out.astype(jnp.float32))
    bf = jnp.dot(b_dense.astype(jnp.float32), w_out.astype(jnp.float32)) + b_out
    y = jnp.dot(features.astype(jnp.bfloat16), wf.astype(jnp.bfloat16),
                preferred_element_type=jnp.float32) + bf
    return jax.nn.sigmoid(y)


if __name__ == "__main__":
    # Small synthetic config: hidden_size=32, num_labels=4, M=300 feature rows.
    # Exercises the small-H pad path (32 -> 128 lanes), label padding (4 -> 128),
    # the megacore tm cap (tm -> 152, grid of 2), and a masked final row tile.
    hidden_size = 32
    num_labels = 4
    M = 300

    key = jax.random.PRNGKey(0)
    k_x, k_w1, k_b1, k_w2, k_b2 = jax.random.split(key, 5)

    features = jax.random.normal(k_x, (M, hidden_size), dtype=jnp.float32)

    # PyTorch Linear stores weight as (out_features, in_features); build them
    # that way deterministically, then transpose to (in, out) for the kernel.
    dense_weight = jax.random.normal(k_w1, (hidden_size, hidden_size),
                                     dtype=jnp.float32) * 0.05
    dense_bias = jax.random.normal(k_b1, (hidden_size,), dtype=jnp.float32) * 0.05
    out_weight = jax.random.normal(k_w2, (num_labels, hidden_size),
                                   dtype=jnp.float32) * 0.05
    out_bias = jax.random.normal(k_b2, (num_labels,), dtype=jnp.float32) * 0.05

    w_dense = dense_weight.T   # (H, H) in->out
    w_out = out_weight.T       # (H, L) in->out

    out = classification_head(features, w_dense, dense_bias, w_out, out_bias)
    out = jax.block_until_ready(out)

    assert out.shape == (M, num_labels)

    ref_mirror = reference_fused_bf16(features, w_dense, dense_bias, w_out, out_bias)
    ref_f32 = reference_f32(features, w_dense, dense_bias, w_out, out_bias)
    assert jnp.allclose(out, ref_mirror, atol=1e-4, rtol=1e-4), \
        "mismatch vs fused-bf16 mirrored reference"
    assert jnp.allclose(out, ref_f32, atol=2e-2, rtol=0), \
        "mismatch vs f32 reference (bf16 MXU tolerance)"

    # TODO(synk): Dropout is implemented as eval-mode identity only; training-mode
    # Bernoulli masking (classifier_dropout > 0 during training) is not emitted.
    print("KERNEL_OK")
</pallas_src>

<mosaic_0001>
module attributes {stable_mosaic.version = 11 : i64} {
  func.func @_head_kernel(%arg0: i32, %arg1: memref<152x128xbf16, #tpu.memory_space<vmem>>, %arg2: memref<128x128xbf16, #tpu.memory_space<vmem>>, %arg3: memref<1x128xf32, #tpu.memory_space<vmem>>, %arg4: memref<152x128xf32, #tpu.memory_space<vmem>>) attributes {dimension_semantics = [#tpu.dimension_semantics<parallel>], iteration_bounds = array<i64: 2>, scalar_prefetch = 0 : i64, scratch_operands = 0 : i64, tpu.core_type = #tpu.core_type<tc>, window_params = [{transform_indices = @transform_0, window_bounds = array<i64: 152, 128>}, {pipeline_mode = #tpu.pipeline_mode<synchronous>, transform_indices = @transform_1, window_bounds = array<i64: 128, 128>}, {pipeline_mode = #tpu.pipeline_mode<synchronous>, transform_indices = @transform_2, window_bounds = array<i64: 1, 128>}, {transform_indices = @transform_3, window_bounds = array<i64: 152, 128>}]} {
    %c0 = arith.constant 0 : index
    %c0_0 = arith.constant 0 : index
    %0 = vector.load %arg1[%c0, %c0_0] : memref<152x128xbf16, #tpu.memory_space<vmem>>, vector<152x128xbf16>
    %c0_1 = arith.constant 0 : index
    %c0_2 = arith.constant 0 : index
    %1 = vector.load %arg2[%c0_1, %c0_2] : memref<128x128xbf16, #tpu.memory_space<vmem>>, vector<128x128xbf16>
    %cst = arith.constant dense<0.000000e+00> : vector<152x128xf32>
    %2 = tpu.matmul %0, %1, %cst {dimension_numbers = #tpu.dot_dimension_numbers<[1], [0], [0], [1], [0, 0, 1, 1], [], []>} : vector<152x128xbf16>, vector<128x128xbf16>, vector<152x128xf32> -> vector<152x128xf32>
    %c0_3 = arith.constant 0 : index
    %c0_4 = arith.constant 0 : index
    %3 = vector.load %arg3[%c0_3, %c0_4] : memref<1x128xf32, #tpu.memory_space<vmem>>, vector<1x128xf32>
    %4 = vector.broadcast %3 : vector<1x128xf32> to vector<152x128xf32>
    %5 = arith.addf %2, %4 : vector<152x128xf32>
    %6 = arith.negf %5 : vector<152x128xf32>
    %7 = math.exp %6 : vector<152x128xf32>
    %cst_5 = arith.constant 1.000000e+00 : f32
    %8 = vector.broadcast %cst_5 : f32 to vector<152x128xf32>
    %9 = arith.addf %8, %7 : vector<152x128xf32>
    %10 = arith.divf %8, %9 : vector<152x128xf32>
    %c0_6 = arith.constant 0 : index
    %c0_7 = arith.constant 0 : index
    %11 = vector.load %arg4[%c0_6, %c0_7] : memref<152x128xf32, #tpu.memory_space<vmem>>, vector<152x128xf32>
    tpu.vector_store %arg4[%c0_6, %c0_7], %10 {strides = array<i32>} : memref<152x128xf32, #tpu.memory_space<vmem>>, vector<152x128xf32>,
    return
  }
  func.func @transform_0(%arg0: i32) -> (i32, i32) {
    %c0_i32 = arith.constant 0 : i32
    %c0_i32_0 = arith.constant 0 : i32
    return %arg0, %c0_i32 : i32, i32
  }
  func.func @transform_1(%arg0: i32) -> (i32, i32) {
    %c0_i32 = arith.constant 0 : i32
    %c0_i32_0 = arith.constant 0 : i32
    %c0_i32_1 = arith.constant 0 : i32
    return %c0_i32, %c0_i32_0 : i32, i32
  }
  func.func @transform_2(%arg0: i32) -> (i32, i32) {
    %c0_i32 = arith.constant 0 : i32
    %c0_i32_0 = arith.constant 0 : i32
    %c0_i32_1 = arith.constant 0 : i32
    return %c0_i32, %c0_i32_0 : i32, i32
  }
  func.func @transform_3(%arg0: i32) -> (i32, i32) {
    %c0_i32 = arith.constant 0 : i32
    %c0_i32_0 = arith.constant 0 : i32
    return %arg0, %c0_i32 : i32, i32
  }
}

</mosaic_0001>

<bundles_post_ra>
// kernel: tpu_custom_call.1
= control target key start
LH: loop header
LB: loop body
LE: loop exit
PB: predicated region body
PF: predicated region fallthrough
CT: control target
= control target key end

     0   :  { %8 = vsyncpa [#allocation3], 0  ;;  %s1398_s0 = inlined_call_operand.hbm [shape: bf16[300,128], index: 0, kind: input, shape index: {}]   ;;  %s1399_s1 = inlined_call_operand.hbm [shape: bf16[128,128], index: 1, kind: input, shape index: {}]   ;;  %s1400_s2 = inlined_call_operand.vmem [shape: f32[1,128], index: 2, kind: input, shape index: {}]   ;;  %s1401_s3 = inlined_call_operand.hbm [shape: f32[300,128], index: 3, kind: output, shape index: {}]  }
   0x1   :  { %10 = vsyncpa [#allocation3 + $0x1], 0 }
   0x2   :  { %11 = vsyncpa [#allocation6], 0 }
   0x3   :  { %12 = vsyncpa [#allocation4], 0 }
   0x4   :  { %14 = vsyncpa [#allocation4 + $0x1], 0  ;;  %s1132_s12 = smov 0   ;;  %s1134_s13 = smov 0  }
   0x5   :  { %s1136_s14 = smov 0   ;;  %s1138_s15 = smov 0  }
   0x6 LB: > { %s1153_s16 = sadd.s32 4294967295, %s1103_s15   ;;  %s697_s17 = sadd.s32 4294967294, %s1103_s15   ;;  %s1103_s15 = sphi %s1138_s15, %s1421_s15   ;;  %s1099_s14 = sphi %s1136_s14, %s1420_s14   ;;  %s1095_s13 = sphi %s1134_s13, %s1419_s13   ;;  %s1091_s12 = sphi %s1132_s12, %s1418_s12  }
   0x7   : > { %p40_p0 = scmp.ne.s32.totalorder %s1095_s13, %s1091_s12  ;;  %p1402_p1 = scmp.eq.s32.totalorder %s1153_s16, 0 }
   0x8   : > { %p112_p3 = scmp.eq.s32.totalorder %s697_s17, 1  ;;  %p698_p5 = scmp.ge.s32.totalorder %s1103_s15, 1 }
   0x9   : > { %p1162_p4 = por %p1402_p1, %p40_p0  ;;  %p119_p7 = scmp.lt.s32.totalorder %s1103_s15, 3 }
   0xa   : > { %p1167_p6 = por %p112_p3, %p40_p0  ;;  %s1105_s21 = smov [#allocation5]  }
   0xb   : > { %s1405_s18 = scalar_select %p1162_p4, 1, 0 }
   0xc   : > { %s1406_s19 = scalar_select %p1167_p6, 1, 0 }
   0xd   : > { %p1172_p8 = pnand %p698_p5, %p119_p7  ;;  %s131_s22 = sshll.u32 %s1105_s21, 4  ;;  %s1176_s22 = int_to_ptr.vmem [resolvable:$true] %s131_s22 }
   0xe   : > { %s1188_s24 = sadd.s32 1, %s1103_s15   ;;  %s27_s25 = sadd.s32 1, %s1099_s14 }
   0xf   : > { %s1407_s20 = scalar_select %p1172_p8, 1, 0 }
  0x10   : > { %p828_p9 = pneg %p1172_p8  ;;  %s24_s26 = ssub.s32 %s1103_s15, %s1188_s24 }
  0x11   : > { %s975_s29 = scalar_lea.hbm %s1399_s1, 1024 }
  0x12   : > { %p1183_p11 = pnand %p828_p9, %p1402_p1  ;;  %p976_p12 = scmp.ne.s32.totalorder %s1399_s1, %s975_s29 }
  0x13   : > { %p982_p5 = scmp.lt.u32.totalorder %s975_s29, %s1399_s1 }
  0x14   : > { %p977_p13 = pneg %p1183_p11 }
  0x16   : > { %p978_p0 = pnand %p977_p13, %p976_p12 }
  0x18   : > { %p979_p3 = pneg %p978_p0 }
  0x1a   : > { %p984_p7 = pnand %p982_p5, %p979_p3 }
  0x1c   : > { %987 = shalt.err (!%p984_p7)
}
  0x1d   : > { %s988_s7 = scalar_lea.vmem %s1176_s22, 1024  ;;  %p996_p2 = scmp.lt.s32.totalorder %s1176_s22, %s1176_s22 }
  0x1e   : > { %p989_p9 = scmp.ne.s32.totalorder %s1176_s22, %s988_s7  ;;  %p997_p6 = scmp.lt.s32.totalorder %s988_s7, %s988_s7 }
  0x20   : > { %p991_p10 = pnand %p989_p9, %p977_p13  ;;  %p998_p4 = por %p997_p6, %p996_p2 }
  0x22   : > { %p992_p1 = pneg %p991_p10 }
  0x24   : > { %p999_p8 = pnand %p998_p4, %p992_p1 }
  0x26   : > { %1002 = shalt.err (!%p999_p8)
}
  0x27   : > { %s1106_s8 = smov 64   ;;  %s1107_s9 = smov 4  }
  0x28   : > { %831 = dma.hbm_to_vmem [thread:$0]  (!%p1183_p11), %s1399_s1, 1024, %s1176_s22, [#allocation6], %s1106_s8, %s1106_s8, %s1107_s9  }
  0x29   : > { %p25_p1 = scmp.eq.s32.totalorder %s24_s26, 0  ;;  %p34_p2 = scmp.ne.s32.totalorder %s1099_s14, %s1095_s13 }
  0x2a   : > { %p35_p4 = scmp.eq.s32.totalorder %s1103_s15, 0  ;;  %p841_p6 = scmp.lt.s32.totalorder %s1103_s15, 2 }
  0x2b   : > { %s1222_s17 = scalar_select %p25_p1, %s1099_s14, %s27_s25  }
  0x2c   : > { %p36_p8 = por %p35_p4, %p34_p2  ;;  %p1409_p10 = scmp.eq.s32.totalorder %s1153_s16, 1 }
  0x2d   : > { %s148_s23 = sand.u32 1, %s1099_s14   ;;  %s745_s27 = smul.u32 1216, %s1103_s15 }
  0x2e   : > { %p1226_p12 = por %p1409_p10, %p34_p2  ;;  %s817_s28 = smul.u32 76, %s148_s23 }
  0x2f   : > { %p1232_p13 = pnand %p841_p6, %p36_p8  ;;  %s1239_s25 = scalar_lea.hbm %s1398_s0, %s745_s27 }
  0x30   : > { %s152_s30 = scalar_lea.vmem [#allocation2], %s817_s28  ;;  %s1243_s5 = scalar_lea.sflag [#allocation3], %s148_s23 }
  0x31   : > { %s159_s4 = sshll.u32 %s152_s30, 4  ;;  %s1003_s6 = scalar_lea.hbm %s1239_s25, 1216  ;;  %s1241_s4 = int_to_ptr.vmem [resolvable:$true] %s159_s4 }
  0x32   : > { %p1004_p11 = scmp.ne.s32.totalorder %s1239_s25, %s1003_s6  ;;  %p1005_p0 = pneg %p1232_p13 }
  0x33   : > { %s1008_s11 = scalar_lea.hbm %s1398_s0, 2432  ;;  %p1009_p7 = scmp.lt.u32.totalorder %s1239_s25, %s1398_s0 }
  0x34   : > { %p1006_p3 = pnand %p1005_p0, %p1004_p11  ;;  %p1010_p9 = scmp.lt.u32.totalorder %s1008_s11, %s1003_s6 }
  0x35   : > { %p1012_p2 = scmp.lt.u32.totalorder %s1003_s6, %s1239_s25 }
  0x36   : > { %p1007_p5 = pneg %p1006_p3  ;;  %p1011_p1 = por %p1010_p9, %p1009_p7 }
  0x38   : > { %p1013_p4 = por %p1012_p2, %p1011_p1 }
  0x3a   : > { %p1014_p6 = pnand %p1013_p4, %p1007_p5 }
  0x3c   : > { %1017 = shalt.err (!%p1014_p6)
}
  0x3d   : > { %s1018_s23 = scalar_lea.vmem %s1241_s4, 1216  ;;  %s1108_s28 = smov [#allocation2]  }
  0x3e   : > { %p1019_p8 = scmp.ne.s32.totalorder %s1241_s4, %s1018_s23  ;;  %s1023_s26 = sshll.u32 %s1108_s28, 4  ;;  %s1024_s26 = int_to_ptr.vmem [resolvable:$false] %s1023_s26 }
  0x3f   : > { %s1025_s30 = scalar_lea.vmem %s1024_s26, 2432  ;;  %p1026_p3 = scmp.lt.s32.totalorder %s1241_s4, %s1024_s26 }
  0x40   : > { %p1021_p10 = pnand %p1019_p8, %p1005_p0  ;;  %p1027_p7 = scmp.lt.s32.totalorder %s1025_s30, %s1018_s23 }
  0x42   : > { %p1022_p11 = pneg %p1021_p10  ;;  %p1028_p9 = por %p1027_p7, %p1026_p3 }
  0x44   : > { %p1029_p1 = pnand %p1028_p9, %p1022_p11 }
  0x46   : > { %1032 = shalt.err (!%p1029_p1)
}
  0x47   : > { %835 = dma.hbm_to_vmem [thread:$0]  (!%p1232_p13), %s1239_s25, 1216, %s1241_s4, %s1243_s5, %s1106_s8, %s1106_s8, %s1107_s9  }
  0x48   : > { %p1412_p0 = scmp.ne.s32.totalorder %s1407_s20, 0 }
  0x49   : > { %s1277_s6 = sand.u32 (!%p1412_p0), 1, %s1095_s13   ;;  %p1413_p5 = scmp.ne.s32.totalorder (!%p1412_p0), %s1405_s18, 0 }
  0x4a   : > { %171 = sbr.rel (%p1412_p0) target bundleno = 404 (0x194), region = 32  ;;  %s174_s10 = scalar_lea.sflag (!%p1412_p0), [#allocation3], %s1277_s6 }
  0x4b   : > { %s818_s7 = smul.u32 (!%p1412_p0), 76, %s1277_s6 }
  0x4d   : > { %s1281_s11 = scalar_lea.vmem (!%p1412_p0), [#allocation2], %s818_s7 }
  0x51   : > { %1078 = dma.done.wait (%p1413_p5), %s174_s10, 1216  }
  0x52   : > { %1080 = vsyncadd (%p1413_p5), %s174_s10, 4294966080  ;;  %p1414_p13 = scmp.eq.s32.totalorder %s1153_s16, 0 }
  0x54   : > { %1082 = dma.done.wait (%p1414_p13), [#allocation6], 1024   ;;  %p1415_p2 = pmov %p1414_p13 }
  0x55   : > { %v881_v0 = vld [vmem:[#allocation5] sm:$0xff]   ;;  %v882_v1 = vld [vmem:[#allocation5 + $0x8] sm:$0xff]   ;;  %v883_v2 = vld [vmem:[#allocation5 + $0x10] sm:$0xff]   ;;  %s819_s8 = smul.u32 152, %s1277_s6  ;;  %s1109_s23 = smov [#allocation7]  }
  0x56   : > { %1084 = vsyncadd (%p1415_p2), [#allocation6], 4294966272  ;;  %765 = vmatprep.subr.bf16.mxu0 %v881_v0  ;;  %801 = vmatprep.subr.bf16.mxu1 %v881_v0  ;;  %v884_v3 = vld [vmem:[#allocation5 + $0x18] sm:$0xff]   ;;  %v885_v6 = vld [vmem:[#allocation5 + $0x20] sm:$0xff]   ;;  %s746_s29 = smul.u32 2432, %s1153_s16  ;;  %s601_s16 = scalar_lea.sflag [#allocation4], %s1277_s6 }
  0x57   : > { %766 = vmatpush3.bf16.msra.mxu0 %v881_v0  ;;  %809 = vmatpush3.bf16.msra.mxu1 %v881_v0  ;;  %v889_v4 = vld [vmem:[%s1281_s11] sm:$0xff]   ;;  %v891_v5 = vld [vmem:[%s1281_s11 + $0x30] sm:$0xff]   ;;  %v890_v10 = vld [vmem:[%s1281_s11 + $0x8] sm:$0xff]   ;;  %s1326_s9 = scalar_lea.vmem [#allocation7], %s819_s8  ;;  %s1037_s28 = sshll.u32 %s1109_s23, 4  ;;  %s1038_s28 = int_to_ptr.vmem [resolvable:$false] %s1037_s28 }
  0x58   : > { %767 = vmatprep.subr.bf16.mxu0 %v882_v1  ;;  %802 = vmatprep.subr.bf16.mxu1 %v882_v1  ;;  %v886_v7 = vld [vmem:[#allocation5 + $0x28] sm:$0xff]   ;;  %v887_v8 = vld [vmem:[#allocation5 + $0x30] sm:$0xff]   ;;  %v888_v9 = vld [vmem:[#allocation5 + $0x38] sm:$0xff]   ;;  %s614_s25 = sshll.u32 %s1326_s9, 4  ;;  %s1349_s27 = scalar_lea.hbm %s1401_s3, %s746_s29  ;;  %s1351_s25 = int_to_ptr.vmem [resolvable:$true] %s614_s25 }
  0x59   : > { %781 = vmatprep.mubr.bf16.mxu0 %v889_v4  ;;  %793 = vmatprep.mubr.bf16.mxu1 %v891_v5  ;;  %v892_v11 = vld [vmem:[%s1281_s11 + $0x38] sm:$0xff]   ;;  %v893_v12 = vld [vmem:[%s1281_s11 + $0x10] sm:$0xff]   ;;  %v895_v13 = vld [vmem:[%s1281_s11 + $0x40] sm:$0xff]   ;;  %s1033_s22 = scalar_lea.vmem %s1351_s25, 2432  ;;  %s1039_s26 = scalar_lea.vmem %s1038_s28, 4864 }
  0x5a   : > { %v894_v14 = vld [vmem:[%s1281_s11 + $0x18] sm:$0xff]   ;;  %v896_v15 = vld [vmem:[%s1281_s11 + $0x48] ss:$0 sps:$4 sm:$0xff]   ;;  %v897_v16 = vld [vmem:[%s1281_s11 + $0x20] sm:$0xff]   ;;  %p1034_p4 = scmp.ne.s32.totalorder %s1351_s25, %s1033_s22  ;;  %p1040_p10 = scmp.lt.s32.totalorder %s1351_s25, %s1038_s28 }
  0x5b   : > { %768 = vmatpush3.bf16.msra.mxu0 %v882_v1  ;;  %810 = vmatpush3.bf16.msra.mxu1 %v882_v1  ;;  %v898_v17 = vld [vmem:[%s1281_s11 + $0x28] sm:$0xff]   ;;  %v1304_v18 = vld [vmem:[%s1400_s2] ss:$0 sm:$0xff]  ;;  %p1041_p11 = scmp.lt.s32.totalorder %s1039_s26, %s1033_s22 }
  0x5c   : > { %769 = vmatprep.subr.bf16.mxu0 %v883_v2  ;;  %803 = vmatprep.subr.bf16.mxu1 %v883_v2  ;;  %p1035_p6 = pnand %p1034_p4, %p1226_p12 }
  0x5d   : > { %p1042_p3 = por %p1041_p11, %p1040_p10 }
  0x5e   : > { %p1036_p8 = pneg %p1035_p6 }
  0x5f   : > { %770 = vmatpush3.bf16.msra.mxu0 %v883_v2  ;;  %811 = vmatpush3.bf16.msra.mxu1 %v883_v2 }
  0x60   : > { %771 = vmatprep.subr.bf16.mxu0 %v884_v3  ;;  %804 = vmatprep.subr.bf16.mxu1 %v884_v3  ;;  %p1043_p7 = pnand %p1042_p3, %p1036_p8 }
  0x63   : > { %772 = vmatpush3.bf16.msra.mxu0 %v884_v3  ;;  %812 = vmatpush3.bf16.msra.mxu1 %v884_v3 }
  0x64   : > { %773 = vmatprep.subr.bf16.mxu0 %v885_v6  ;;  %805 = vmatprep.subr.bf16.mxu1 %v885_v6 }
  0x67   : > { %774 = vmatpush3.bf16.msra.mxu0 %v885_v6  ;;  %813 = vmatpush3.bf16.msra.mxu1 %v885_v6 }
  0x68   : > { %775 = vmatprep.subr.bf16.mxu0 %v886_v7  ;;  %806 = vmatprep.subr.bf16.mxu1 %v886_v7 }
  0x6b   : > { %776 = vmatpush3.bf16.msra.mxu0 %v886_v7  ;;  %814 = vmatpush3.bf16.msra.mxu1 %v886_v7 }
  0x6c   : > { %777 = vmatprep.subr.bf16.mxu0 %v887_v8  ;;  %807 = vmatprep.subr.bf16.mxu1 %v887_v8 }
  0x6f   : > { %778 = vmatpush3.bf16.msra.mxu0 %v887_v8  ;;  %815 = vmatpush3.bf16.msra.mxu1 %v887_v8 }
  0x70   : > { %779 = vmatprep.subr.bf16.mxu0 %v888_v9  ;;  %808 = vmatprep.subr.bf16.mxu1 %v888_v9 }
  0x73   : > { %780 = vmatpush3.bf16.msra.mxu0 %v888_v9  ;;  %816 = vmatpush3.bf16.msra.mxu1 %v888_v9 }
  0x76   : > { %782 = vmatmul.mubr.bf16.vlgmr.msra.gmra.mrb[0].mxu0 %v890_v10  ;;  %794 = vmatmul.mubr.bf16.vlgmr.msra.gmra.mrb[0].mxu1 %v892_v11 }
  0x77   : > { %785 = vmatprep.mubr.bf16.mxu0 %v893_v12  ;;  %797 = vmatprep.mubr.bf16.mxu1 %v895_v13 }
  0x7e   : > { %786 = vmatmul.mubr.bf16.gmra.mrb[4].mxu0 %v894_v14  ;;  %798 = vmatmul.mubr.bf16.gmra.mrb[4].mxu1 %v896_v15 }
  0x7f   : > { %789 = vmatprep.mubr.bf16.mxu0 %v897_v16 }
  0x86   : > { %790 = vmatmul.mubr.bf16.gmra.mrb[8].mxu0 %v898_v17 }
 0x149   : > { %v783_v19 = vpop.f32.mrb[0].mxu0  ;;  %v795_v20 = vpop.f32.mrb[0].mxu1 }
 0x14a   : > { %v398_v21 = vadd.f32 %v783_v19, %v1304_v18  ;;  %v389_v22 = vpop.f32.mrb[1].mxu0  ;;  %v446_v23 = vadd.f32 %v795_v20, %v1304_v18  ;;  %v437_v24 = vpop.f32.mrb[1].mxu1 }
 0x14b   : > { %v390_v25 = vadd.f32 %v1304_v18, %v389_v22  ;;  %v784_v26 = vpop.f32.mrb[2].mxu0  ;;  %v438_v27 = vadd.f32 %v1304_v18, %v437_v24  ;;  %v796_v28 = vpop.f32.mrb[2].mxu1 }
 0x14c   : > { %v725_v29 = vmul.f32 -1.442695, %v398_v21  ;;  %v401_v30 = vadd.f32 %v784_v26, %v1304_v18  ;;  %v392_v31 = vpop.f32.mrb[3].mxu0  ;;  %v449_v32 = vadd.f32 %v796_v28, %v1304_v18  ;;  %v440_v33 = vpop.f32.mrb[3].mxu1  ;;  %v737_v38 = vmul.f32 -1.442695, %v446_v23 }
 0x14d   : > { %v723_v34 = vmul.f32 -1.442695, %v390_v25  ;;  %v393_v35 = vadd.f32 %v1304_v18, %v392_v31  ;;  %v441_v36 = vadd.f32 %v1304_v18, %v440_v33  ;;  %v735_v40 = vmul.f32 -1.442695, %v438_v27 }
 0x14e   : > { %899 = vpow2.f32 %v725_v29  ;;  %v726_v37 = vmul.f32 -1.442695, %v401_v30  ;;  %v738_v41 = vmul.f32 -1.442695, %v449_v32 }
 0x14f   : > { %901 = vpow2.f32 %v723_v34  ;;  %v724_v39 = vmul.f32 -1.442695, %v393_v35  ;;  %v736_v43 = vmul.f32 -1.442695, %v441_v36 }
 0x150   : > { %903 = vpow2.f32 %v726_v37 }
 0x151   : > { %905 = vpow2.f32 %v724_v39  ;;  %v787_v42 = vpop.f32.mrb[4].mxu0  ;;  %v799_v44 = vpop.f32.mrb[4].mxu1 }
 0x152   : > { %907 = vpow2.f32 %v737_v38  ;;  %v414_v45 = vadd.f32 %v787_v42, %v1304_v18  ;;  %v405_v46 = vpop.f32.mrb[5].mxu0  ;;  %v462_v47 = vadd.f32 %v799_v44, %v1304_v18  ;;  %v453_v48 = vpop.f32.mrb[5].mxu1 }
 0x153   : > { %909 = vpow2.f32 %v735_v40  ;;  %v406_v49 = vadd.f32 %v1304_v18, %v405_v46  ;;  %v788_v50 = vpop.f32.mrb[6].mxu0  ;;  %v800_v51 = vpop.f32.mrb[6].mxu1  ;;  %v454_v19 = vadd.f32 %v1304_v18, %v453_v48 }
 0x154   : > { %911 = vpow2.f32 %v738_v41  ;;  %v729_v52 = vmul.f32 -1.442695, %v414_v45  ;;  %v417_v53 = vadd.f32 %v788_v50, %v1304_v18  ;;  %v408_v54 = vpop.f32.mrb[7].mxu0  ;;  %v456_v55 = vpop.f32.mrb[7].mxu1  ;;  %v741_v59 = vmul.f32 -1.442695, %v462_v47 }
 0x155   : > { %913 = vpow2.f32 %v736_v43  ;;  %v727_v56 = vmul.f32 -1.442695, %v406_v49  ;;  %v409_v57 = vadd.f32 %v1304_v18, %v408_v54  ;;  %v457_v25 = vadd.f32 %v1304_v18, %v456_v55 }
 0x156   : > { %915 = vpow2.f32 %v729_v52  ;;  %v730_v58 = vmul.f32 -1.442695, %v417_v53  ;;  %v739_v31 = vmul.f32 -1.442695, %v454_v19 }
 0x157   : > { %917 = vpow2.f32 %v727_v56  ;;  %v728_v60 = vmul.f32 -1.442695, %v409_v57  ;;  %v740_v38 = vmul.f32 -1.442695, %v457_v25 }
 0x158   : > { %v900_v61 = vpop.eup %899  ;;  %919 = vpow2.f32 %v730_v58 }
 0x159   : > { %v902_v62 = vpop.eup %901  ;;  %v526_v63 = vadd.f32 1.0, %v900_v61  ;;  %921 = vpow2.f32 %v728_v60  ;;  %v791_v0 = vpop.f32.mrb[8].mxu0 }
 0x15a   : > { %v904_v1 = vpop.eup %903  ;;  %v524_v2 = vadd.f32 1.0, %v902_v62  ;;  %923 = vpow2.f32 %v741_v59  ;;  %v421_v3 = vpop.f32.mrb[9].mxu0  ;;  %v430_v22 = vadd.f32 %v791_v0, %v1304_v18 }
 0x15b   : > { %v906_v4 = vpop.eup %905  ;;  %925 = vrcp.f32 %v526_v63  ;;  %v527_v5 = vadd.f32 1.0, %v904_v1  ;;  %v792_v6 = vpop.f32.mrb[10].mxu0  ;;  %v422_v28 = vadd.f32 %v1304_v18, %v421_v3 }
 0x15c   : > { %v908_v7 = vpop.eup %907  ;;  %927 = vrcp.f32 %v524_v2  ;;  %v525_v8 = vadd.f32 1.0, %v906_v4  ;;  %v424_v9 = vpop.f32.mrb[11].mxu0  ;;  %v433_v32 = vadd.f32 %v792_v6, %v1304_v18  ;;  %v733_v35 = vmul.f32 -1.442695, %v430_v22 }
 0x15d   : > { %v910_v10 = vpop.eup %909  ;;  %929 = vrcp.f32 %v527_v5  ;;  %v538_v11 = vadd.f32 1.0, %v908_v7  ;;  %v425_v36 = vadd.f32 %v1304_v18, %v424_v9  ;;  %v731_v40 = vmul.f32 -1.442695, %v422_v28 }
 0x15e   : > { %v912_v12 = vpop.eup %911  ;;  %931 = vrcp.f32 %v525_v8  ;;  %v536_v13 = vadd.f32 1.0, %v910_v10  ;;  %v734_v18 = vmul.f32 -1.442695, %v433_v32 }
 0x15f   : > { %v914_v14 = vpop.eup %913  ;;  %933 = vrcp.f32 %v538_v11  ;;  %v539_v15 = vadd.f32 1.0, %v912_v12  ;;  %v732_v43 = vmul.f32 -1.442695, %v425_v36 }
 0x160   : > { %v916_v16 = vpop.eup %915  ;;  %935 = vrcp.f32 %v536_v13  ;;  %v537_v17 = vadd.f32 1.0, %v914_v14 }
 0x161   : > { %v918_v20 = vpop.eup %917  ;;  %937 = vrcp.f32 %v539_v15  ;;  %v530_v21 = vadd.f32 1.0, %v916_v16 }
 0x162   : > { %v920_v23 = vpop.eup %919  ;;  %939 = vrcp.f32 %v537_v17  ;;  %v528_v24 = vadd.f32 1.0, %v918_v20 }
 0x163   : > { %v922_v26 = vpop.eup %921  ;;  %941 = vrcp.f32 %v530_v21  ;;  %v531_v27 = vadd.f32 1.0, %v920_v23 }
 0x164   : > { %v924_v29 = vpop.eup %923  ;;  %943 = vrcp.f32 %v528_v24  ;;  %v529_v30 = vadd.f32 1.0, %v922_v26 }
 0x165   : > { %v926_v33 = vpop.eup %925  ;;  %945 = vrcp.f32 %v531_v27  ;;  %v542_v34 = vadd.f32 1.0, %v924_v29 }
 0x166   : > { %v928_v37 = vpop.eup %927  ;;  %583 = vst [vmem:[%s1326_s9 + $0x10] sm:$0xff] %v926_v33  ;;  %947 = vrcp.f32 %v529_v30 }
 0x167   : > { %v930_v39 = vpop.eup %929  ;;  %581 = vst [vmem:[%s1326_s9] sm:$0xff] %v928_v37  ;;  %949 = vrcp.f32 %v542_v34 }
 0x168   : > { %v932_v41 = vpop.eup %931  ;;  %584 = vst [vmem:[%s1326_s9 + $0x18] sm:$0xff] %v930_v39  ;;  %951 = vpow2.f32 %v739_v31 }
 0x169   : > { %v934_v42 = vpop.eup %933  ;;  %582 = vst [vmem:[%s1326_s9 + $0x8] sm:$0xff] %v932_v41  ;;  %953 = vpow2.f32 %v733_v35 }
 0x16a   : > { %v936_v44 = vpop.eup %935  ;;  %595 = vst [vmem:[%s1326_s9 + $0x70] sm:$0xff] %v934_v42  ;;  %955 = vpow2.f32 %v740_v38 }
 0x16b   : > { %v938_v45 = vpop.eup %937  ;;  %593 = vst [vmem:[%s1326_s9 + $0x60] sm:$0xff] %v936_v44  ;;  %957 = vpow2.f32 %v731_v40 }
 0x16c   : > { %v940_v46 = vpop.eup %939  ;;  %596 = vst [vmem:[%s1326_s9 + $0x78] sm:$0xff] %v938_v45  ;;  %959 = vpow2.f32 %v734_v18 }
 0x16d   : > { %v942_v47 = vpop.eup %941  ;;  %594 = vst [vmem:[%s1326_s9 + $0x68] sm:$0xff] %v940_v46  ;;  %961 = vpow2.f32 %v732_v43 }
 0x16e   : > { %v944_v48 = vpop.eup %943  ;;  %587 = vst [vmem:[%s1326_s9 + $0x30] sm:$0xff] %v942_v47 }
 0x16f   : > { %v946_v49 = vpop.eup %945  ;;  %585 = vst [vmem:[%s1326_s9 + $0x20] sm:$0xff] %v944_v48 }
 0x170   : > { %v948_v50 = vpop.eup %947  ;;  %588 = vst [vmem:[%s1326_s9 + $0x38] sm:$0xff] %v946_v49 }
 0x171   : > { %v950_v51 = vpop.eup %949  ;;  %586 = vst [vmem:[%s1326_s9 + $0x28] sm:$0xff] %v948_v50 }
 0x172   : > { %v952_v52 = vpop.eup %951  ;;  %599 = vst [vmem:[%s1326_s9 + $0x90] sm:$0xff] %v950_v51 }
 0x173   : > { %v954_v53 = vpop.eup %953  ;;  %v540_v54 = vadd.f32 1.0, %v952_v52 }
 0x174   : > { %v956_v55 = vpop.eup %955  ;;  %v534_v56 = vadd.f32 1.0, %v954_v53 }
 0x175   : > { %v958_v57 = vpop.eup %957  ;;  %963 = vrcp.f32 %v540_v54  ;;  %v541_v58 = vadd.f32 1.0, %v956_v55 }
 0x176   : > { %v960_v59 = vpop.eup %959  ;;  %965 = vrcp.f32 %v534_v56  ;;  %v532_v60 = vadd.f32 1.0, %v958_v57 }
 0x177   : > { %v962_v61 = vpop.eup %961  ;;  %967 = vrcp.f32 %v541_v58  ;;  %v535_v62 = vadd.f32 1.0, %v960_v59 }
 0x178   : > { %969 = vrcp.f32 %v532_v60  ;;  %v533_v63 = vadd.f32 1.0, %v962_v61 }
 0x179   : > { %971 = vrcp.f32 %v535_v62 }
 0x17a   : > { %973 = vrcp.f32 %v533_v63 }
 0x17f   : > { %v964_v0 = vpop.eup %963 }
 0x180   : > { %v966_v1 = vpop.eup %965  ;;  %597 = vst [vmem:[%s1326_s9 + $0x80] sm:$0xff] %v964_v0 }
 0x181   : > { %v968_v2 = vpop.eup %967  ;;  %591 = vst [vmem:[%s1326_s9 + $0x50] sm:$0xff] %v966_v1 }
 0x182   : > { %v970_v3 = vpop.eup %969  ;;  %598 = vst [vmem:[%s1326_s9 + $0x88] sm:$0xff] %v968_v2 }
 0x183   : > { %v972_v4 = vpop.eup %971  ;;  %589 = vst [vmem:[%s1326_s9 + $0x40] sm:$0xff] %v970_v3 }
 0x184   : > { %v974_v5 = vpop.eup %973  ;;  %592 = vst [vmem:[%s1326_s9 + $0x58] sm:$0xff] %v972_v4 }
 0x185   : > { %590 = vst [vmem:[%s1326_s9 + $0x48] sm:$0xff] %v974_v5 }
 0x186   : > { %1046 = shalt.err (!%p1043_p7)
}
 0x187   : > { %s1047_s30 = scalar_lea.hbm %s1349_s27, 2432  ;;  %s1051_s11 = scalar_lea.hbm %s1401_s3, 4864 }
 0x188   : > { %p1048_p9 = scmp.ne.s32.totalorder %s1349_s27, %s1047_s30  ;;  %p1052_p5 = scmp.lt.u32.totalorder %s1349_s27, %s1401_s3 }
 0x189   : > { %p1053_p13 = scmp.lt.u32.totalorder %s1051_s11, %s1047_s30  ;;  %p1055_p4 = scmp.lt.u32.totalorder %s1047_s30, %s1349_s27 }
 0x18a   : > { %p1049_p1 = pnand %p1048_p9, %p1226_p12 }
 0x18b   : > { %p1054_p2 = por %p1053_p13, %p1052_p5 }
 0x18c   : > { %p1050_p0 = pneg %p1049_p1 }
 0x18d   : > { %p1056_p6 = por %p1055_p4, %p1054_p2 }
 0x18f   : > { %p1057_p8 = pnand %p1056_p6, %p1050_p0 }
 0x191   : > { %1060 = shalt.err (!%p1057_p8)
}
 0x192   : > { %s1110_s8 = smov 128   ;;  %s1111_s9 = smov 8  }
 0x193   : > { %826 = dma.vmem_to_hbm [thread:$0]  (%p1226_p12), %s1351_s25, 2432, %s1349_s27, %s601_s16, %s1110_s8, %s1110_s8, %s1111_s9  }
 0x194 PF: > { %s629_s29 = sand.u32 1, %s1091_s12   ;;  %p1416_p10 = scmp.ne.s32.totalorder %s1406_s19, 0 }
 0x195   : > { %p1417_p11 = scmp.ge.s32.totalorder %s1103_s15, 2  ;;  %s630_s4 = scalar_lea.sflag [#allocation4], %s629_s29 }
 0x197   : > { %p837_p3 = pnand %p1417_p11, %p1416_p10 }
 0x199   : > { %1086 = dma.done.wait (!%p837_p3), %s630_s4, 2432  }
 0x19a   : > { %1088 = vsyncadd (!%p837_p3), %s630_s4, 4294964864  ;;  %p17_p7 = scmp.ge.s32.totalorder %s1188_s24, 4   ;;  %s1418_s12 = smov %s1095_s13 }
 0x19b   : > { %s1419_s13 = smov %s1099_s14  ;;  %s1420_s14 = smov %s1222_s17 }
 0x19c   : > { %s1421_s15 = smov %s1188_s24  ;;  %19 = sbr.rel (!%p17_p7) target bundleno = 6 (0x6), region = 81 }
 0x1a3   :  { %635 = vsyncpa [#allocation3], 1 }
 0x1a4   :  { %637 = vsyncpa [#allocation3 + $0x1], 1 }
 0x1a5   :  { %638 = vsyncpa [#allocation6], 1 }
 0x1a6   :  { %639 = vsyncpa [#allocation4], 1 }
 0x1a7   :  { %641 = vsyncpa [#allocation4 + $0x1], 1 }

</bundles_post_ra>
